<compile_context>
chip_gen: v6e
topology: v6e:2x2x1
jax: 0.10.0
libtpu: 0.0.40
codegen_flags: <defaults>
</compile_context>

<pallas_src>
import functools

import jax
import jax.numpy as jnp
from jax import lax
from jax.experimental import pallas as pl
from jax.experimental.pallas import tpu as pltpu


def _round_up(x, m):
    return (x + m - 1) // m * m


def _lstm_tagger_kernel(embeds_ref, wih_ref, whh_ref, b_ref, who_ref, bho_ref,
                        out_ref, gx_ref, hall_ref, h_ref, c_ref, *,
                        chunk_len, hidden_dim, tag_dim, mm_dtype):
    H = hidden_dim

    # Initialize the carried LSTM state on the first time chunk only.
    @pl.when(pl.program_id(0) == 0)
    def _():
        h_ref[...] = jnp.zeros_like(h_ref)
        c_ref[...] = jnp.zeros_like(c_ref)

    # Hoisted input projection for this chunk: one (TS, E) @ (E, Gp) matmul.
    gx_ref[...] = (
        jnp.dot(embeds_ref[...], wih_ref[...], preferred_element_type=jnp.float32)
        + b_ref[...])

    # Packed recurrent weights: (H, Gp) bf16 ~= 2 vregs for H=32; cheap to keep
    # resident across the whole chunk.
    # TODO(synk): if a bundle dump shows Mosaic re-pushing this loop-invariant
    # RHS every step, latch it once via pltpu.matmul_push_rhs / matmul_acc_lhs.
    whh = whh_ref[...]

    def step(t, carry):
        h, c = carry                                                   # (1, H) f32
        gates = gx_ref[pl.ds(t, 1), :] + jnp.dot(
            h.astype(mm_dtype), whh, preferred_element_type=jnp.float32)   # (1, Gp)
        # 2 EUP pushes cover all 4 gates: sigmoid(x) == 0.5*(1 + tanh(x/2)).
        sig_all = 0.5 * (jnp.tanh(0.5 * gates) + 1.0)
        tanh_all = jnp.tanh(gates)
        # PyTorch gate order i, f, g, o; segment alignment lands on the XLU slot.
        i = sig_all[:, 0 * H:1 * H]
        f = sig_all[:, 1 * H:2 * H]
        g = tanh_all[:, 2 * H:3 * H]
        o = sig_all[:, 3 * H:4 * H]
        c_new = f * c + i * g
        h_new = o * jnp.tanh(c_new)                                    # 3rd EUP push
        # TODO(synk): for v5e with long S, buffer 8 rows and store a full
        # sublane tile every 8 steps instead of a per-step masked store.
        hall_ref[pl.ds(t, 1), :] = h_new
        return h_new, c_new

    h_fin, c_fin = lax.fori_loop(0, chunk_len, step,
                                 (h_ref[...], c_ref[...]), unroll=8)
    h_ref[...] = h_fin
    c_ref[...] = c_fin

    # Batched tag head + log_softmax, written as ONE lane-dense (TS, Tp) slab.
    tag = (jnp.dot(hall_ref[...].astype(mm_dtype), who_ref[...],
                   preferred_element_type=jnp.float32) + bho_ref[...])
    col = lax.broadcasted_iota(jnp.int32, tag.shape, 1)
    tag = jnp.where(col < tag_dim, tag, jnp.float32(-1e30))   # mask pad tag columns
    m = jnp.max(tag, axis=1, keepdims=True)
    lse = m + jnp.log(jnp.sum(jnp.exp(tag - m), axis=1, keepdims=True))
    out_ref[...] = tag - lse


def lstm_tagger_forward(sentence, params, *, use_bf16_weights=True, time_chunk=512):
    """Forward pass matching LSTMTagger.forward (batch size 1, seq-major)."""
    emb = params["emb"]            # (V, E)
    w_ih = params["w_ih"]          # (4H, E)
    w_hh = params["w_hh"]          # (4H, H)
    b_ih = params["b_ih"]          # (4H,)
    b_hh = params["b_hh"]          # (4H,)
    w_ho = params["w_ho"]          # (T, H)
    b_ho = params["b_ho"]          # (T,)

    S = sentence.shape[0]
    E = emb.shape[1]
    H = w_hh.shape[1]
    T = w_ho.shape[0]
    G = 4 * H

    Gp = _round_up(G, 128)                                  # packed gate width
    Tp = _round_up(T, 128)                                  # lane-dense output width
    TS = min(_round_up(time_chunk, 8), _round_up(S, 8))     # time-chunk length
    n_chunks = pl.cdiv(S, TS)
    Spad = n_chunks * TS

    mm_dtype = jnp.bfloat16 if use_bf16_weights else jnp.float32

    # Embedding gather (data-dependent indexing) stays in JAX glue.
    # TODO(synk): for long S / large E, scalar-prefetch the indices and gather
    # in-kernel via a pl.Element row-gather BlockSpec to skip one HBM round trip.
    embeds = emb[sentence]                                               # (S, E)
    embeds = jnp.pad(embeds, ((0, Spad - S), (0, 0))).astype(mm_dtype)   # (Spad, E)

    # Pre-transpose to (in, out); fold the two LSTM biases; pad the packed 4H
    # gate axis and the tag axis to lane multiples (pads are zero and inert).
    wih_p = jnp.pad(jnp.transpose(w_ih), ((0, 0), (0, Gp - G))).astype(mm_dtype)  # (E, Gp)
    whh_p = jnp.pad(jnp.transpose(w_hh), ((0, 0), (0, Gp - G))).astype(mm_dtype)  # (H, Gp)
    b_p = jnp.pad((b_ih + b_hh).reshape(1, G), ((0, 0), (0, Gp - G)))             # (1, Gp) f32
    who_p = jnp.pad(jnp.transpose(w_ho), ((0, 0), (0, Tp - T))).astype(mm_dtype)  # (H, Tp)
    bho_p = jnp.pad(b_ho.reshape(1, T), ((0, 0), (0, Tp - T)))                    # (1, Tp) f32

    kernel = functools.partial(
        _lstm_tagger_kernel, chunk_len=TS, hidden_dim=H, tag_dim=T,
        mm_dtype=mm_dtype)

    operands = (embeds, wih_p, whh_p, b_p, who_p, bho_p)

    # Per-chunk VMEM footprint -> explicit scoped-VMEM limit (with headroom).
    f32b = 4
    weight_bytes = sum(int(x.size) * x.dtype.itemsize for x in operands[1:])
    per_chunk_bytes = (
        2 * TS * E * embeds.dtype.itemsize      # embeds (double-buffered)
        + 2 * TS * Tp * f32b                    # output (double-buffered)
        + TS * Gp * f32b + TS * H * f32b        # gx + hall scratch
        + 2 * H * f32b                          # carried h/c
        + 2 * weight_bytes)
    vmem_limit = int(min(64 * 2**20, max(8 * 2**20, 2 * per_chunk_bytes)))

    bytes_accessed = int(sum(int(x.size) * x.dtype.itemsize for x in operands)
                         + Spad * Tp * f32b)
    flops = int(2 * Spad * (E * Gp + H * Gp + H * Tp))
    transcendentals = int(Spad * (3 * Gp + Tp))

    out_padded = pl.pallas_call(
        kernel,
        out_shape=jax.ShapeDtypeStruct((Spad, Tp), jnp.float32),
        grid_spec=pltpu.PrefetchScalarGridSpec(
            num_scalar_prefetch=0,
            grid=(n_chunks,),                   # sequential time chunks (h/c carried)
            in_specs=[
                pl.BlockSpec((TS, E), lambda i: (i, 0)),
                pl.BlockSpec((E, Gp), lambda i: (0, 0)),
                pl.BlockSpec((H, Gp), lambda i: (0, 0)),
                pl.BlockSpec((1, Gp), lambda i: (0, 0)),
                pl.BlockSpec((H, Tp), lambda i: (0, 0)),
                pl.BlockSpec((1, Tp), lambda i: (0, 0)),
            ],
            out_specs=pl.BlockSpec((TS, Tp), lambda i: (i, 0)),
            scratch_shapes=[
                pltpu.VMEM((TS, Gp), jnp.float32),   # hoisted input-projection gates
                pltpu.VMEM((TS, H), jnp.float32),    # h_t history for the tag head
                pltpu.VMEM((1, H), jnp.float32),     # carried h (persists across chunks)
                pltpu.VMEM((1, H), jnp.float32),     # carried c (persists across chunks)
            ],
        ),
        compiler_params=pltpu.CompilerParams(
            dimension_semantics=("arbitrary",),
            vmem_limit_bytes=vmem_limit),
        cost_estimate=pl.CostEstimate(
            flops=flops, transcendentals=transcendentals,
            bytes_accessed=bytes_accessed),
    )(*operands)

    # TODO(synk): if the workload ever allows multiple sentences per call, pack
    # batch into the sublane dim and add a "parallel" grid axis (v7x 2-TC split).
    return out_padded[:S, :T]


def _reference_forward(sentence, params, *, use_bf16_weights=True):
    """Pure-JAX reference mirroring the module (and the kernel's operand dtypes)."""
    mm_dtype = jnp.bfloat16 if use_bf16_weights else jnp.float32
    f32 = lambda x: x.astype(jnp.float32)

    H = params["w_hh"].shape[1]
    embeds = params["emb"][sentence].astype(mm_dtype)            # (S, E)
    w_ih_t = jnp.transpose(params["w_ih"]).astype(mm_dtype)      # (E, 4H)
    w_hh_t = jnp.transpose(params["w_hh"]).astype(mm_dtype)      # (H, 4H)
    b_gate = params["b_ih"] + params["b_hh"]                     # (4H,)
    w_ho_t = jnp.transpose(params["w_ho"]).astype(mm_dtype)      # (H, T)

    gates_x = f32(embeds) @ f32(w_ih_t) + b_gate                 # (S, 4H)
    h = jnp.zeros((1, H), jnp.float32)
    c = jnp.zeros((1, H), jnp.float32)
    outs = []
    for t in range(sentence.shape[0]):
        gates = gates_x[t][None, :] + f32(h.astype(mm_dtype)) @ f32(w_hh_t)
        i = jax.nn.sigmoid(gates[:, 0 * H:1 * H])
        f = jax.nn.sigmoid(gates[:, 1 * H:2 * H])
        g = jnp.tanh(gates[:, 2 * H:3 * H])
        o = jax.nn.sigmoid(gates[:, 3 * H:4 * H])
        c = f * c + i * g
        h = o * jnp.tanh(c)
        outs.append(h[0])
    lstm_out = jnp.stack(outs)                                   # (S, H)
    tag = f32(lstm_out.astype(mm_dtype)) @ f32(w_ho_t) + params["b_ho"]
    return jax.nn.log_softmax(tag, axis=1)


def init_params(key, vocab_size, embedding_dim, hidden_dim, tagset_size):
    ks = jax.random.split(key, 7)
    s = 1.0 / jnp.sqrt(hidden_dim)
    u = lambda k, shape: jax.random.uniform(k, shape, jnp.float32, -s, s)
    return {
        "emb":  jax.random.normal(ks[0], (vocab_size, embedding_dim), jnp.float32),
        "w_ih": u(ks[1], (4 * hidden_dim, embedding_dim)),
        "w_hh": u(ks[2], (4 * hidden_dim, hidden_dim)),
        "b_ih": u(ks[3], (4 * hidden_dim,)),
        "b_hh": u(ks[4], (4 * hidden_dim,)),
        "w_ho": u(ks[5], (tagset_size, hidden_dim)),
        "b_ho": u(ks[6], (tagset_size,)),
    }


if __name__ == "__main__":
    VOCAB, EMBED, HIDDEN, TAGS, SEQ = 20, 16, 32, 8, 8

    key = jax.random.PRNGKey(0)
    k_params, k_sent = jax.random.split(key)
    params = init_params(k_params, VOCAB, EMBED, HIDDEN, TAGS)
    sentence = jax.random.randint(k_sent, (SEQ,), 0, VOCAB, dtype=jnp.int32)

    out = lstm_tagger_forward(sentence, params)
    out = jax.block_until_ready(out)
    assert out.shape == (SEQ, TAGS)

    # Exact-math check (reference uses the same bf16 matmul operands as the kernel).
    ref_same = _reference_forward(sentence, params, use_bf16_weights=True)
    assert jnp.allclose(out, ref_same, atol=1e-3, rtol=1e-3), "mismatch vs reference"

    # Sanity check against the pure-f32 PyTorch-equivalent math (bf16 rounding slack).
    ref_f32 = _reference_forward(sentence, params, use_bf16_weights=False)
    assert jnp.allclose(out, ref_f32, atol=5e-2, rtol=5e-2), "mismatch vs f32 module reference"

    print("KERNEL_OK")
</pallas_src>

<mosaic_0001>
module attributes {stable_mosaic.version = 11 : i64} {
  func.func @_lstm_tagger_kernel(%arg0: i32, %arg1: memref<8x16xbf16, #tpu.memory_space<vmem>>, %arg2: memref<16x128xbf16, #tpu.memory_space<vmem>>, %arg3: memref<32x128xbf16, #tpu.memory_space<vmem>>, %arg4: memref<1x128xf32, #tpu.memory_space<vmem>>, %arg5: memref<32x128xbf16, #tpu.memory_space<vmem>>, %arg6: memref<1x128xf32, #tpu.memory_space<vmem>>, %arg7: memref<8x128xf32, #tpu.memory_space<vmem>>, %arg8: memref<8x128xf32, #tpu.memory_space<vmem>>, %arg9: memref<8x32xf32, #tpu.memory_space<vmem>>, %arg10: memref<1x32xf32, #tpu.memory_space<vmem>>, %arg11: memref<1x32xf32, #tpu.memory_space<vmem>>) attributes {dimension_semantics = [#tpu.dimension_semantics<arbitrary>], iteration_bounds = array<i64: 1>, scalar_prefetch = 0 : i64, scratch_operands = 4 : i64, tpu.core_type = #tpu.core_type<tc>, window_params = [{transform_indices = @transform_0, window_bounds = array<i64: 8, 16>}, {pipeline_mode = #tpu.pipeline_mode<synchronous>, transform_indices = @transform_1, window_bounds = array<i64: 16, 128>}, {pipeline_mode = #tpu.pipeline_mode<synchronous>, transform_indices = @transform_2, window_bounds = array<i64: 32, 128>}, {pipeline_mode = #tpu.pipeline_mode<synchronous>, transform_indices = @transform_3, window_bounds = array<i64: 1, 128>}, {pipeline_mode = #tpu.pipeline_mode<synchronous>, transform_indices = @transform_4, window_bounds = array<i64: 32, 128>}, {pipeline_mode = #tpu.pipeline_mode<synchronous>, transform_indices = @transform_5, window_bounds = array<i64: 1, 128>}, {transform_indices = @transform_6, window_bounds = array<i64: 8, 128>}]} {
    %c0_i32 = arith.constant 0 : i32
    %0 = arith.cmpi eq, %arg0, %c0_i32 : i32
    %1 = arith.extui %0 : i1 to i32
    %c0_i32_0 = arith.constant 0 : i32
    %2 = arith.cmpi ne, %1, %c0_i32_0 : i32
    scf.if %2 {
      %cst_80 = arith.constant 0.000000e+00 : f32
      %231 = vector.broadcast %cst_80 : f32 to vector<1x32xf32>
      %c0_81 = arith.constant 0 : index
      %c0_82 = arith.constant 0 : index
      %232 = vector.load %arg10[%c0_81, %c0_82] : memref<1x32xf32, #tpu.memory_space<vmem>>, vector<1x32xf32>
      tpu.vector_store %arg10[%c0_81, %c0_82], %231 {strides = array<i32>} : memref<1x32xf32, #tpu.memory_space<vmem>>, vector<1x32xf32>,
      %cst_83 = arith.constant 0.000000e+00 : f32
      %233 = vector.broadcast %cst_83 : f32 to vector<1x32xf32>
      %c0_84 = arith.constant 0 : index
      %c0_85 = arith.constant 0 : index
      %234 = vector.load %arg11[%c0_84, %c0_85] : memref<1x32xf32, #tpu.memory_space<vmem>>, vector<1x32xf32>
      tpu.vector_store %arg11[%c0_84, %c0_85], %233 {strides = array<i32>} : memref<1x32xf32, #tpu.memory_space<vmem>>, vector<1x32xf32>,
    } else {
    }
    %c0 = arith.constant 0 : index
    %c0_1 = arith.constant 0 : index
    %3 = vector.load %arg1[%c0, %c0_1] : memref<8x16xbf16, #tpu.memory_space<vmem>>, vector<8x16xbf16>
    %c0_2 = arith.constant 0 : index
    %c0_3 = arith.constant 0 : index
    %4 = vector.load %arg2[%c0_2, %c0_3] : memref<16x128xbf16, #tpu.memory_space<vmem>>, vector<16x128xbf16>
    %cst = arith.constant dense<0.000000e+00> : vector<8x128xf32>
    %5 = tpu.matmul %3, %4, %cst {dimension_numbers = #tpu.dot_dimension_numbers<[1], [0], [0], [1], [0, 0, 1, 1], [], []>} : vector<8x16xbf16>, vector<16x128xbf16>, vector<8x128xf32> -> vector<8x128xf32>
    %c0_4 = arith.constant 0 : index
    %c0_5 = arith.constant 0 : index
    %6 = vector.load %arg4[%c0_4, %c0_5] : memref<1x128xf32, #tpu.memory_space<vmem>>, vector<1x128xf32>
    %7 = vector.broadcast %6 : vector<1x128xf32> to vector<8x128xf32>
    %8 = arith.addf %5, %7 : vector<8x128xf32>
    %c0_6 = arith.constant 0 : index
    %c0_7 = arith.constant 0 : index
    %9 = vector.load %arg8[%c0_6, %c0_7] : memref<8x128xf32, #tpu.memory_space<vmem>>, vector<8x128xf32>
    tpu.vector_store %arg8[%c0_6, %c0_7], %8 {strides = array<i32>} : memref<8x128xf32, #tpu.memory_space<vmem>>, vector<8x128xf32>,
    %c0_8 = arith.constant 0 : index
    %c0_9 = arith.constant 0 : index
    %10 = vector.load %arg3[%c0_8, %c0_9] : memref<32x128xbf16, #tpu.memory_space<vmem>>, vector<32x128xbf16>
    %c0_10 = arith.constant 0 : index
    %c0_11 = arith.constant 0 : index
    %11 = vector.load %arg10[%c0_10, %c0_11] : memref<1x32xf32, #tpu.memory_space<vmem>>, vector<1x32xf32>
    %c0_12 = arith.constant 0 : index
    %c0_13 = arith.constant 0 : index
    %12 = vector.load %arg11[%c0_12, %c0_13] : memref<1x32xf32, #tpu.memory_space<vmem>>, vector<1x32xf32>
    %c0_i32_14 = arith.constant 0 : i32
    %13 = arith.index_cast %c0_i32_14 : i32 to index
    %c0_15 = arith.constant 0 : index
    %14 = vector.load %arg8[%13, %c0_15] : memref<8x128xf32, #tpu.memory_space<vmem>>, vector<1x128xf32>
    %15 = arith.truncf %11 : vector<1x32xf32> to vector<1x32xbf16>
    %cst_16 = arith.constant dense<0.000000e+00> : vector<1x128xf32>
    %16 = tpu.matmul %15, %10, %cst_16 {dimension_numbers = #tpu.dot_dimension_numbers<[1], [0], [0], [1], [0, 0, 1, 1], [], []>} : vector<1x32xbf16>, vector<32x128xbf16>, vector<1x128xf32> -> vector<1x128xf32>
    %17 = arith.addf %14, %16 : vector<1x128xf32>
    %cst_17 = arith.constant 5.000000e-01 : f32
    %18 = vector.broadcast %cst_17 : f32 to vector<1x128xf32>
    %19 = arith.mulf %18, %17 : vector<1x128xf32>
    %20 = math.tanh %19 : vector<1x128xf32>
    %cst_18 = arith.constant 1.000000e+00 : f32
    %21 = vector.broadcast %cst_18 : f32 to vector<1x128xf32>
    %22 = arith.addf %20, %21 : vector<1x128xf32>
    %cst_19 = arith.constant 5.000000e-01 : f32
    %23 = vector.broadcast %cst_19 : f32 to vector<1x128xf32>
    %24 = arith.mulf %23, %22 : vector<1x128xf32>
    %25 = math.tanh %17 : vector<1x128xf32>
    %26 = vector.extract_strided_slice %24 {offsets = [0, 0], sizes = [1, 32], strides = [1, 1]} : vector<1x128xf32> to vector<1x32xf32>
    %27 = vector.extract_strided_slice %24 {offsets = [0, 32], sizes = [1, 32], strides = [1, 1]} : vector<1x128xf32> to vector<1x32xf32>
    %28 = vector.extract_strided_slice %25 {offsets = [0, 64], sizes = [1, 32], strides = [1, 1]} : vector<1x128xf32> to vector<1x32xf32>
    %29 = vector.extract_strided_slice %24 {offsets = [0, 96], sizes = [1, 32], strides = [1, 1]} : vector<1x128xf32> to vector<1x32xf32>
    %30 = arith.mulf %27, %12 : vector<1x32xf32>
    %31 = arith.mulf %26, %28 : vector<1x32xf32>
    %32 = arith.addf %30, %31 : vector<1x32xf32>
    %33 = math.tanh %32 : vector<1x32xf32>
    %34 = arith.mulf %29, %33 : vector<1x32xf32>
    %35 = arith.index_cast %c0_i32_14 : i32 to index
    %c0_20 = arith.constant 0 : index
    %36 = vector.load %arg9[%35, %c0_20] : memref<8x32xf32, #tpu.memory_space<vmem>>, vector<1x32xf32>
    tpu.vector_store %arg9[%35, %c0_20], %34 {strides = array<i32>} : memref<8x32xf32, #tpu.memory_space<vmem>>, vector<1x32xf32>,
    %c1_i32 = arith.constant 1 : i32
    %37 = arith.index_cast %c1_i32 : i32 to index
    %c0_21 = arith.constant 0 : index
    %38 = vector.load %arg8[%37, %c0_21] : memref<8x128xf32, #tpu.memory_space<vmem>>, vector<1x128xf32>
    %39 = arith.truncf %34 : vector<1x32xf32> to vector<1x32xbf16>
    %cst_22 = arith.constant dense<0.000000e+00> : vector<1x128xf32>
    %40 = tpu.matmul %39, %10, %cst_22 {dimension_numbers = #tpu.dot_dimension_numbers<[1], [0], [0], [1], [0, 0, 1, 1], [], []>} : vector<1x32xbf16>, vector<32x128xbf16>, vector<1x128xf32> -> vector<1x128xf32>
    %41 = arith.addf %38, %40 : vector<1x128xf32>
    %cst_23 = arith.constant 5.000000e-01 : f32
    %42 = vector.broadcast %cst_23 : f32 to vector<1x128xf32>
    %43 = arith.mulf %42, %41 : vector<1x128xf32>
    %44 = math.tanh %43 : vector<1x128xf32>
    %cst_24 = arith.constant 1.000000e+00 : f32
    %45 = vector.broadcast %cst_24 : f32 to vector<1x128xf32>
    %46 = arith.addf %44, %45 : vector<1x128xf32>
    %cst_25 = arith.constant 5.000000e-01 : f32
    %47 = vector.broadcast %cst_25 : f32 to vector<1x128xf32>
    %48 = arith.mulf %47, %46 : vector<1x128xf32>
    %49 = math.tanh %41 : vector<1x128xf32>
    %50 = vector.extract_strided_slice %48 {offsets = [0, 0], sizes = [1, 32], strides = [1, 1]} : vector<1x128xf32> to vector<1x32xf32>
    %51 = vector.extract_strided_slice %48 {offsets = [0, 32], sizes = [1, 32], strides = [1, 1]} : vector<1x128xf32> to vector<1x32xf32>
    %52 = vector.extract_strided_slice %49 {offsets = [0, 64], sizes = [1, 32], strides = [1, 1]} : vector<1x128xf32> to vector<1x32xf32>
    %53 = vector.extract_strided_slice %48 {offsets = [0, 96], sizes = [1, 32], strides = [1, 1]} : vector<1x128xf32> to vector<1x32xf32>
    %54 = arith.mulf %51, %32 : vector<1x32xf32>
    %55 = arith.mulf %50, %52 : vector<1x32xf32>
    %56 = arith.addf %54, %55 : vector<1x32xf32>
    %57 = math.tanh %56 : vector<1x32xf32>
    %58 = arith.mulf %53, %57 : vector<1x32xf32>
    %59 = arith.index_cast %c1_i32 : i32 to index
    %c0_26 = arith.constant 0 : index
    %60 = vector.load %arg9[%59, %c0_26] : memref<8x32xf32, #tpu.memory_space<vmem>>, vector<1x32xf32>
    tpu.vector_store %arg9[%59, %c0_26], %58 {strides = array<i32>} : memref<8x32xf32, #tpu.memory_space<vmem>>, vector<1x32xf32>,
    %c2_i32 = arith.constant 2 : i32
    %61 = arith.index_cast %c2_i32 : i32 to index
    %c0_27 = arith.constant 0 : index
    %62 = vector.load %arg8[%61, %c0_27] : memref<8x128xf32, #tpu.memory_space<vmem>>, vector<1x128xf32>
    %63 = arith.truncf %58 : vector<1x32xf32> to vector<1x32xbf16>
    %cst_28 = arith.constant dense<0.000000e+00> : vector<1x128xf32>
    %64 = tpu.matmul %63, %10, %cst_28 {dimension_numbers = #tpu.dot_dimension_numbers<[1], [0], [0], [1], [0, 0, 1, 1], [], []>} : vector<1x32xbf16>, vector<32x128xbf16>, vector<1x128xf32> -> vector<1x128xf32>
    %65 = arith.addf %62, %64 : vector<1x128xf32>
    %cst_29 = arith.constant 5.000000e-01 : f32
    %66 = vector.broadcast %cst_29 : f32 to vector<1x128xf32>
    %67 = arith.mulf %66, %65 : vector<1x128xf32>
    %68 = math.tanh %67 : vector<1x128xf32>
    %cst_30 = arith.constant 1.000000e+00 : f32
    %69 = vector.broadcast %cst_30 : f32 to vector<1x128xf32>
    %70 = arith.addf %68, %69 : vector<1x128xf32>
    %cst_31 = arith.constant 5.000000e-01 : f32
    %71 = vector.broadcast %cst_31 : f32 to vector<1x128xf32>
    %72 = arith.mulf %71, %70 : vector<1x128xf32>
    %73 = math.tanh %65 : vector<1x128xf32>
    %74 = vector.extract_strided_slice %72 {offsets = [0, 0], sizes = [1, 32], strides = [1, 1]} : vector<1x128xf32> to vector<1x32xf32>
    %75 = vector.extract_strided_slice %72 {offsets = [0, 32], sizes = [1, 32], strides = [1, 1]} : vector<1x128xf32> to vector<1x32xf32>
    %76 = vector.extract_strided_slice %73 {offsets = [0, 64], sizes = [1, 32], strides = [1, 1]} : vector<1x128xf32> to vector<1x32xf32>
    %77 = vector.extract_strided_slice %72 {offsets = [0, 96], sizes = [1, 32], strides = [1, 1]} : vector<1x128xf32> to vector<1x32xf32>
    %78 = arith.mulf %75, %56 : vector<1x32xf32>
    %79 = arith.mulf %74, %76 : vector<1x32xf32>
    %80 = arith.addf %78, %79 : vector<1x32xf32>
    %81 = math.tanh %80 : vector<1x32xf32>
    %82 = arith.mulf %77, %81 : vector<1x32xf32>
    %83 = arith.index_cast %c2_i32 : i32 to index
    %c0_32 = arith.constant 0 : index
    %84 = vector.load %arg9[%83, %c0_32] : memref<8x32xf32, #tpu.memory_space<vmem>>, vector<1x32xf32>
    tpu.vector_store %arg9[%83, %c0_32], %82 {strides = array<i32>} : memref<8x32xf32, #tpu.memory_space<vmem>>, vector<1x32xf32>,
    %c3_i32 = arith.constant 3 : i32
    %85 = arith.index_cast %c3_i32 : i32 to index
    %c0_33 = arith.constant 0 : index
    %86 = vector.load %arg8[%85, %c0_33] : memref<8x128xf32, #tpu.memory_space<vmem>>, vector<1x128xf32>
    %87 = arith.truncf %82 : vector<1x32xf32> to vector<1x32xbf16>
    %cst_34 = arith.constant dense<0.000000e+00> : vector<1x128xf32>
    %88 = tpu.matmul %87, %10, %cst_34 {dimension_numbers = #tpu.dot_dimension_numbers<[1], [0], [0], [1], [0, 0, 1, 1], [], []>} : vector<1x32xbf16>, vector<32x128xbf16>, vector<1x128xf32> -> vector<1x128xf32>
    %89 = arith.addf %86, %88 : vector<1x128xf32>
    %cst_35 = arith.constant 5.000000e-01 : f32
    %90 = vector.broadcast %cst_35 : f32 to vector<1x128xf32>
    %91 = arith.mulf %90, %89 : vector<1x128xf32>
    %92 = math.tanh %91 : vector<1x128xf32>
    %cst_36 = arith.constant 1.000000e+00 : f32
    %93 = vector.broadcast %cst_36 : f32 to vector<1x128xf32>
    %94 = arith.addf %92, %93 : vector<1x128xf32>
    %cst_37 = arith.constant 5.000000e-01 : f32
    %95 = vector.broadcast %cst_37 : f32 to vector<1x128xf32>
    %96 = arith.mulf %95, %94 : vector<1x128xf32>
    %97 = math.tanh %89 : vector<1x128xf32>
    %98 = vector.extract_strided_slice %96 {offsets = [0, 0], sizes = [1, 32], strides = [1, 1]} : vector<1x128xf32> to vector<1x32xf32>
    %99 = vector.extract_strided_slice %96 {offsets = [0, 32], sizes = [1, 32], strides = [1, 1]} : vector<1x128xf32> to vector<1x32xf32>
    %100 = vector.extract_strided_slice %97 {offsets = [0, 64], sizes = [1, 32], strides = [1, 1]} : vector<1x128xf32> to vector<1x32xf32>
    %101 = vector.extract_strided_slice %96 {offsets = [0, 96], sizes = [1, 32], strides = [1, 1]} : vector<1x128xf32> to vector<1x32xf32>
    %102 = arith.mulf %99, %80 : vector<1x32xf32>
    %103 = arith.mulf %98, %100 : vector<1x32xf32>
    %104 = arith.addf %102, %103 : vector<1x32xf32>
    %105 = math.tanh %104 : vector<1x32xf32>
    %106 = arith.mulf %101, %105 : vector<1x32xf32>
    %107 = arith.index_cast %c3_i32 : i32 to index
    %c0_38 = arith.constant 0 : index
    %108 = vector.load %arg9[%107, %c0_38] : memref<8x32xf32, #tpu.memory_space<vmem>>, vector<1x32xf32>
    tpu.vector_store %arg9[%107, %c0_38], %106 {strides = array<i32>} : memref<8x32xf32, #tpu.memory_space<vmem>>, vector<1x32xf32>,
    %c4_i32 = arith.constant 4 : i32
    %109 = arith.index_cast %c4_i32 : i32 to index
    %c0_39 = arith.constant 0 : index
    %110 = vector.load %arg8[%109, %c0_39] : memref<8x128xf32, #tpu.memory_space<vmem>>, vector<1x128xf32>
    %111 = arith.truncf %106 : vector<1x32xf32> to vector<1x32xbf16>
    %cst_40 = arith.constant dense<0.000000e+00> : vector<1x128xf32>
    %112 = tpu.matmul %111, %10, %cst_40 {dimension_numbers = #tpu.dot_dimension_numbers<[1], [0], [0], [1], [0, 0, 1, 1], [], []>} : vector<1x32xbf16>, vector<32x128xbf16>, vector<1x128xf32> -> vector<1x128xf32>
    %113 = arith.addf %110, %112 : vector<1x128xf32>
    %cst_41 = arith.constant 5.000000e-01 : f32
    %114 = vector.broadcast %cst_41 : f32 to vector<1x128xf32>
    %115 = arith.mulf %114, %113 : vector<1x128xf32>
    %116 = math.tanh %115 : vector<1x128xf32>
    %cst_42 = arith.constant 1.000000e+00 : f32
    %117 = vector.broadcast %cst_42 : f32 to vector<1x128xf32>
    %118 = arith.addf %116, %117 : vector<1x128xf32>
    %cst_43 = arith.constant 5.000000e-01 : f32
    %119 = vector.broadcast %cst_43 : f32 to vector<1x128xf32>
    %120 = arith.mulf %119, %118 : vector<1x128xf32>
    %121 = math.tanh %113 : vector<1x128xf32>
    %122 = vector.extract_strided_slice %120 {offsets = [0, 0], sizes = [1, 32], strides = [1, 1]} : vector<1x128xf32> to vector<1x32xf32>
    %123 = vector.extract_strided_slice %120 {offsets = [0, 32], sizes = [1, 32], strides = [1, 1]} : vector<1x128xf32> to vector<1x32xf32>
    %124 = vector.extract_strided_slice %121 {offsets = [0, 64], sizes = [1, 32], strides = [1, 1]} : vector<1x128xf32> to vector<1x32xf32>
    %125 = vector.extract_strided_slice %120 {offsets = [0, 96], sizes = [1, 32], strides = [1, 1]} : vector<1x128xf32> to vector<1x32xf32>
    %126 = arith.mulf %123, %104 : vector<1x32xf32>
    %127 = arith.mulf %122, %124 : vector<1x32xf32>
    %128 = arith.addf %126, %127 : vector<1x32xf32>
    %129 = math.tanh %128 : vector<1x32xf32>
    %130 = arith.mulf %125, %129 : vector<1x32xf32>
    %131 = arith.index_cast %c4_i32 : i32 to index
    %c0_44 = arith.constant 0 : index
    %132 = vector.load %arg9[%131, %c0_44] : memref<8x32xf32, #tpu.memory_space<vmem>>, vector<1x32xf32>
    tpu.vector_store %arg9[%131, %c0_44], %130 {strides = array<i32>} : memref<8x32xf32, #tpu.memory_space<vmem>>, vector<1x32xf32>,
    %c5_i32 = arith.constant 5 : i32
    %133 = arith.index_cast %c5_i32 : i32 to index
    %c0_45 = arith.constant 0 : index
    %134 = vector.load %arg8[%133, %c0_45] : memref<8x128xf32, #tpu.memory_space<vmem>>, vector<1x128xf32>
    %135 = arith.truncf %130 : vector<1x32xf32> to vector<1x32xbf16>
    %cst_46 = arith.constant dense<0.000000e+00> : vector<1x128xf32>
    %136 = tpu.matmul %135, %10, %cst_46 {dimension_numbers = #tpu.dot_dimension_numbers<[1], [0], [0], [1], [0, 0, 1, 1], [], []>} : vector<1x32xbf16>, vector<32x128xbf16>, vector<1x128xf32> -> vector<1x128xf32>
    %137 = arith.addf %134, %136 : vector<1x128xf32>
    %cst_47 = arith.constant 5.000000e-01 : f32
    %138 = vector.broadcast %cst_47 : f32 to vector<1x128xf32>
    %139 = arith.mulf %138, %137 : vector<1x128xf32>
    %140 = math.tanh %139 : vector<1x128xf32>
    %cst_48 = arith.constant 1.000000e+00 : f32
    %141 = vector.broadcast %cst_48 : f32 to vector<1x128xf32>
    %142 = arith.addf %140, %141 : vector<1x128xf32>
    %cst_49 = arith.constant 5.000000e-01 : f32
    %143 = vector.broadcast %cst_49 : f32 to vector<1x128xf32>
    %144 = arith.mulf %143, %142 : vector<1x128xf32>
    %145 = math.tanh %137 : vector<1x128xf32>
    %146 = vector.extract_strided_slice %144 {offsets = [0, 0], sizes = [1, 32], strides = [1, 1]} : vector<1x128xf32> to vector<1x32xf32>
    %147 = vector.extract_strided_slice %144 {offsets = [0, 32], sizes = [1, 32], strides = [1, 1]} : vector<1x128xf32> to vector<1x32xf32>
    %148 = vector.extract_strided_slice %145 {offsets = [0, 64], sizes = [1, 32], strides = [1, 1]} : vector<1x128xf32> to vector<1x32xf32>
    %149 = vector.extract_strided_slice %144 {offsets = [0, 96], sizes = [1, 32], strides = [1, 1]} : vector<1x128xf32> to vector<1x32xf32>
    %150 = arith.mulf %147, %128 : vector<1x32xf32>
    %151 = arith.mulf %146, %148 : vector<1x32xf32>
    %152 = arith.addf %150, %151 : vector<1x32xf32>
    %153 = math.tanh %152 : vector<1x32xf32>
    %154 = arith.mulf %149, %153 : vector<1x32xf32>
    %155 = arith.index_cast %c5_i32 : i32 to index
    %c0_50 = arith.constant 0 : index
    %156 = vector.load %arg9[%155, %c0_50] : memref<8x32xf32, #tpu.memory_space<vmem>>, vector<1x32xf32>
    tpu.vector_store %arg9[%155, %c0_50], %154 {strides = array<i32>} : memref<8x32xf32, #tpu.memory_space<vmem>>, vector<1x32xf32>,
    %c6_i32 = arith.constant 6 : i32
    %157 = arith.index_cast %c6_i32 : i32 to index
    %c0_51 = arith.constant 0 : index
    %158 = vector.load %arg8[%157, %c0_51] : memref<8x128xf32, #tpu.memory_space<vmem>>, vector<1x128xf32>
    %159 = arith.truncf %154 : vector<1x32xf32> to vector<1x32xbf16>
    %cst_52 = arith.constant dense<0.000000e+00> : vector<1x128xf32>
    %160 = tpu.matmul %159, %10, %cst_52 {dimension_numbers = #tpu.dot_dimension_numbers<[1], [0], [0], [1], [0, 0, 1, 1], [], []>} : vector<1x32xbf16>, vector<32x128xbf16>, vector<1x128xf32> -> vector<1x128xf32>
    %161 = arith.addf %158, %160 : vector<1x128xf32>
    %cst_53 = arith.constant 5.000000e-01 : f32
    %162 = vector.broadcast %cst_53 : f32 to vector<1x128xf32>
    %163 = arith.mulf %162, %161 : vector<1x128xf32>
    %164 = math.tanh %163 : vector<1x128xf32>
    %cst_54 = arith.constant 1.000000e+00 : f32
    %165 = vector.broadcast %cst_54 : f32 to vector<1x128xf32>
    %166 = arith.addf %164, %165 : vector<1x128xf32>
    %cst_55 = arith.constant 5.000000e-01 : f32
    %167 = vector.broadcast %cst_55 : f32 to vector<1x128xf32>
    %168 = arith.mulf %167, %166 : vector<1x128xf32>
    %169 = math.tanh %161 : vector<1x128xf32>
    %170 = vector.extract_strided_slice %168 {offsets = [0, 0], sizes = [1, 32], strides = [1, 1]} : vector<1x128xf32> to vector<1x32xf32>
    %171 = vector.extract_strided_slice %168 {offsets = [0, 32], sizes = [1, 32], strides = [1, 1]} : vector<1x128xf32> to vector<1x32xf32>
    %172 = vector.extract_strided_slice %169 {offsets = [0, 64], sizes = [1, 32], strides = [1, 1]} : vector<1x128xf32> to vector<1x32xf32>
    %173 = vector.extract_strided_slice %168 {offsets = [0, 96], sizes = [1, 32], strides = [1, 1]} : vector<1x128xf32> to vector<1x32xf32>
    %174 = arith.mulf %171, %152 : vector<1x32xf32>
    %175 = arith.mulf %170, %172 : vector<1x32xf32>
    %176 = arith.addf %174, %175 : vector<1x32xf32>
    %177 = math.tanh %176 : vector<1x32xf32>
    %178 = arith.mulf %173, %177 : vector<1x32xf32>
    %179 = arith.index_cast %c6_i32 : i32 to index
    %c0_56 = arith.constant 0 : index
    %180 = vector.load %arg9[%179, %c0_56] : memref<8x32xf32, #tpu.memory_space<vmem>>, vector<1x32xf32>
    tpu.vector_store %arg9[%179, %c0_56], %178 {strides = array<i32>} : memref<8x32xf32, #tpu.memory_space<vmem>>, vector<1x32xf32>,
    %c7_i32 = arith.constant 7 : i32
    %181 = arith.index_cast %c7_i32 : i32 to index
    %c0_57 = arith.constant 0 : index
    %182 = vector.load %arg8[%181, %c0_57] : memref<8x128xf32, #tpu.memory_space<vmem>>, vector<1x128xf32>
    %183 = arith.truncf %178 : vector<1x32xf32> to vector<1x32xbf16>
    %cst_58 = arith.constant dense<0.000000e+00> : vector<1x128xf32>
    %184 = tpu.matmul %183, %10, %cst_58 {dimension_numbers = #tpu.dot_dimension_numbers<[1], [0], [0], [1], [0, 0, 1, 1], [], []>} : vector<1x32xbf16>, vector<32x128xbf16>, vector<1x128xf32> -> vector<1x128xf32>
    %185 = arith.addf %182, %184 : vector<1x128xf32>
    %cst_59 = arith.constant 5.000000e-01 : f32
    %186 = vector.broadcast %cst_59 : f32 to vector<1x128xf32>
    %187 = arith.mulf %186, %185 : vector<1x128xf32>
    %188 = math.tanh %187 : vector<1x128xf32>
    %cst_60 = arith.constant 1.000000e+00 : f32
    %189 = vector.broadcast %cst_60 : f32 to vector<1x128xf32>
    %190 = arith.addf %188, %189 : vector<1x128xf32>
    %cst_61 = arith.constant 5.000000e-01 : f32
    %191 = vector.broadcast %cst_61 : f32 to vector<1x128xf32>
    %192 = arith.mulf %191, %190 : vector<1x128xf32>
    %193 = math.tanh %185 : vector<1x128xf32>
    %194 = vector.extract_strided_slice %192 {offsets = [0, 0], sizes = [1, 32], strides = [1, 1]} : vector<1x128xf32> to vector<1x32xf32>
    %195 = vector.extract_strided_slice %192 {offsets = [0, 32], sizes = [1, 32], strides = [1, 1]} : vector<1x128xf32> to vector<1x32xf32>
    %196 = vector.extract_strided_slice %193 {offsets = [0, 64], sizes = [1, 32], strides = [1, 1]} : vector<1x128xf32> to vector<1x32xf32>
    %197 = vector.extract_strided_slice %192 {offsets = [0, 96], sizes = [1, 32], strides = [1, 1]} : vector<1x128xf32> to vector<1x32xf32>
    %198 = arith.mulf %195, %176 : vector<1x32xf32>
    %199 = arith.mulf %194, %196 : vector<1x32xf32>
    %200 = arith.addf %198, %199 : vector<1x32xf32>
    %201 = math.tanh %200 : vector<1x32xf32>
    %202 = arith.mulf %197, %201 : vector<1x32xf32>
    %203 = arith.index_cast %c7_i32 : i32 to index
    %c0_62 = arith.constant 0 : index
    %204 = vector.load %arg9[%203, %c0_62] : memref<8x32xf32, #tpu.memory_space<vmem>>, vector<1x32xf32>
    tpu.vector_store %arg9[%203, %c0_62], %202 {strides = array<i32>} : memref<8x32xf32, #tpu.memory_space<vmem>>, vector<1x32xf32>,
    %c8_i32 = arith.constant 8 : i32
    %c0_63 = arith.constant 0 : index
    %c0_64 = arith.constant 0 : index
    %205 = vector.load %arg10[%c0_63, %c0_64] : memref<1x32xf32, #tpu.memory_space<vmem>>, vector<1x32xf32>
    tpu.vector_store %arg10[%c0_63, %c0_64], %202 {strides = array<i32>} : memref<1x32xf32, #tpu.memory_space<vmem>>, vector<1x32xf32>,
    %c0_65 = arith.constant 0 : index
    %c0_66 = arith.constant 0 : index
    %206 = vector.load %arg11[%c0_65, %c0_66] : memref<1x32xf32, #tpu.memory_space<vmem>>, vector<1x32xf32>
    tpu.vector_store %arg11[%c0_65, %c0_66], %200 {strides = array<i32>} : memref<1x32xf32, #tpu.memory_space<vmem>>, vector<1x32xf32>,
    %c0_67 = arith.constant 0 : index
    %c0_68 = arith.constant 0 : index
    %207 = vector.load %arg9[%c0_67, %c0_68] : memref<8x32xf32, #tpu.memory_space<vmem>>, vector<8x32xf32>
    %208 = arith.truncf %207 : vector<8x32xf32> to vector<8x32xbf16>
    %c0_69 = arith.constant 0 : index
    %c0_70 = arith.constant 0 : index
    %209 = vector.load %arg5[%c0_69, %c0_70] : memref<32x128xbf16, #tpu.memory_space<vmem>>, vector<32x128xbf16>
    %cst_71 = arith.constant dense<0.000000e+00> : vector<8x128xf32>
    %210 = tpu.matmul %208, %209, %cst_71 {dimension_numbers = #tpu.dot_dimension_numbers<[1], [0], [0], [1], [0, 0, 1, 1], [], []>} : vector<8x32xbf16>, vector<32x128xbf16>, vector<8x128xf32> -> vector<8x128xf32>
    %c0_72 = arith.constant 0 : index
    %c0_73 = arith.constant 0 : index
    %211 = vector.load %arg6[%c0_72, %c0_73] : memref<1x128xf32, #tpu.memory_space<vmem>>, vector<1x128xf32>
    %212 = vector.broadcast %211 : vector<1x128xf32> to vector<8x128xf32>
    %213 = arith.addf %210, %212 : vector<8x128xf32>
    %214 = tpu.iota {dimensions = array<i32: 1>} : vector<8x128xi32>
    %c8_i32_74 = arith.constant 8 : i32
    %215 = vector.broadcast %c8_i32_74 : i32 to vector<8x128xi32>
    %216 = arith.cmpi slt, %214, %215 : vector<8x128xi32>
    %cst_75 = arith.constant -1.000000e+30 : f32
    %217 = vector.broadcast %cst_75 : f32 to vector<8x128xf32>
    %218 = arith.select %216, %213, %217 : vector<8x128xi1>, vector<8x128xf32>
    %cst_76 = arith.constant dense<0xFF800000> : vector<8xf32>
    %219 = vector.multi_reduction <maximumf>, %218, %cst_76 [1] : vector<8x128xf32> to vector<8xf32>
    %220 = vector.shape_cast %219 : vector<8xf32> to vector<8x1xf32>
    %221 = vector.broadcast %220 : vector<8x1xf32> to vector<8x128xf32>
    %222 = arith.subf %218, %221 : vector<8x128xf32>
    %223 = math.exp %222 : vector<8x128xf32>
    %cst_77 = arith.constant dense<0.000000e+00> : vector<8xf32>
    %224 = vector.multi_reduction <add>, %223, %cst_77 [1] : vector<8x128xf32> to vector<8xf32>
    %225 = vector.shape_cast %224 : vector<8xf32> to vector<8x1xf32>
    %226 = math.log %225 : vector<8x1xf32>
    %227 = arith.addf %220, %226 : vector<8x1xf32>
    %228 = vector.broadcast %227 : vector<8x1xf32> to vector<8x128xf32>
    %229 = arith.subf %218, %228 : vector<8x128xf32>
    %c0_78 = arith.constant 0 : index
    %c0_79 = arith.constant 0 : index
    %230 = vector.load %arg7[%c0_78, %c0_79] : memref<8x128xf32, #tpu.memory_space<vmem>>, vector<8x128xf32>
    tpu.vector_store %arg7[%c0_78, %c0_79], %229 {strides = array<i32>} : memref<8x128xf32, #tpu.memory_space<vmem>>, vector<8x128xf32>,
    return
  }
  func.func @transform_0(%arg0: i32) -> (i32, i32) {
    %c0_i32 = arith.constant 0 : i32
    %c0_i32_0 = arith.constant 0 : i32
    return %arg0, %c0_i32 : i32, i32
  }
  func.func @transform_1(%arg0: i32) -> (i32, i32) {
    %c0_i32 = arith.constant 0 : i32
    %c0_i32_0 = arith.constant 0 : i32
    %c0_i32_1 = arith.constant 0 : i32
    return %c0_i32, %c0_i32_0 : i32, i32
  }
  func.func @transform_2(%arg0: i32) -> (i32, i32) {
    %c0_i32 = arith.constant 0 : i32
    %c0_i32_0 = arith.constant 0 : i32
    %c0_i32_1 = arith.constant 0 : i32
    return %c0_i32, %c0_i32_0 : i32, i32
  }
  func.func @transform_3(%arg0: i32) -> (i32, i32) {
    %c0_i32 = arith.constant 0 : i32
    %c0_i32_0 = arith.constant 0 : i32
    %c0_i32_1 = arith.constant 0 : i32
    return %c0_i32, %c0_i32_0 : i32, i32
  }
  func.func @transform_4(%arg0: i32) -> (i32, i32) {
    %c0_i32 = arith.constant 0 : i32
    %c0_i32_0 = arith.constant 0 : i32
    %c0_i32_1 = arith.constant 0 : i32
    return %c0_i32, %c0_i32_0 : i32, i32
  }
  func.func @transform_5(%arg0: i32) -> (i32, i32) {
    %c0_i32 = arith.constant 0 : i32
    %c0_i32_0 = arith.constant 0 : i32
    %c0_i32_1 = arith.constant 0 : i32
    return %c0_i32, %c0_i32_0 : i32, i32
  }
  func.func @transform_6(%arg0: i32) -> (i32, i32) {
    %c0_i32 = arith.constant 0 : i32
    %c0_i32_0 = arith.constant 0 : i32
    return %arg0, %c0_i32 : i32, i32
  }
}

</mosaic_0001>

<bundles_post_ra>
// kernel: tpu_custom_call.1
= control target key start
LH: loop header
LB: loop body
LE: loop exit
PB: predicated region body
PF: predicated region fallthrough
CT: control target
= control target key end

     0   :  { %11 = vsyncpa [#allocation7], 0  ;;  %s1415_s0 = inlined_call_operand.hbm [shape: bf16[8,16], index: 0, kind: input, shape index: {}]   ;;  %s1416_s1 = inlined_call_operand.hbm [shape: bf16[16,128], index: 1, kind: input, shape index: {}]   ;;  %s1417_s2 = inlined_call_operand.hbm [shape: bf16[32,128], index: 2, kind: input, shape index: {}]   ;;  %s1418_s3 = inlined_call_operand.vmem [shape: f32[1,128], index: 3, kind: input, shape index: {}]   ;;  %s1419_s4 = inlined_call_operand.hbm [shape: bf16[32,128], index: 4, kind: input, shape index: {}]   ;;  %s1420_s5 = inlined_call_operand.vmem [shape: f32[1,128], index: 5, kind: input, shape index: {}]   ;;  %s1421_s6 = inlined_call_operand.hbm [shape: f32[8,128], index: 6, kind: output, shape index: {}]  }
   0x1   :  { %12 = vsyncpa [#allocation10], 0 }
   0x2   :  { %13 = vsyncpa [#allocation13], 0 }
   0x3   :  { %14 = vsyncpa [#allocation8], 0  ;;  %s1187_s21 = smov [#allocation9]  }
   0x4   :  { %s30_s22 = sshll.u32 %s1187_s21, 4  ;;  %s31_s22 = int_to_ptr.vmem [resolvable:$true] %s30_s22 }
   0x5   :  { %s1087_s23 = scalar_lea.vmem %s31_s22, 128  ;;  %p1092_p1 = scmp.lt.s32.totalorder %s31_s22, %s31_s22 }
   0x6   :  { %p1088_p0 = scmp.ne.s32.totalorder %s31_s22, %s1087_s23  ;;  %p1093_p2 = scmp.lt.s32.totalorder %s1087_s23, %s1087_s23 }
   0x8   :  { %p1094_p3 = por %p1093_p2, %p1092_p1 }
   0xa   :  { %p1095_p4 = pnand %p1094_p3, %p1088_p0 }
   0xc   :  { %1098 = shalt.err (!%p1095_p4)
}
   0xd   :  { %s1188_s24 = smov 64   ;;  %s1189_s25 = smov 4  }
   0xe   :  { %36 = dma.hbm_to_vmem [thread:$0]  %s1416_s1, 128, %s31_s22, [#allocation10], %s1188_s24, %s1188_s24, %s1189_s25  }
   0xf   :  { %s1190_s28 = smov [#allocation6]   ;;  %s1191_s30 = smov [#allocation11]  }
  0x10   :  { %s21_s29 = sshll.u32 %s1190_s28, 4  ;;  %s42_s7 = sshll.u32 %s1191_s30, 4  ;;  %s22_s29 = int_to_ptr.vmem [resolvable:$true] %s21_s29  ;;  %s43_s7 = int_to_ptr.vmem [resolvable:$true] %s42_s7 }
  0x11   :  { %s1107_s8 = scalar_lea.vmem %s22_s29, 64  ;;  %p1112_p6 = scmp.lt.s32.totalorder %s22_s29, %s22_s29 }
  0x12   :  { %p1108_p5 = scmp.ne.s32.totalorder %s22_s29, %s1107_s8  ;;  %p1113_p7 = scmp.lt.s32.totalorder %s1107_s8, %s1107_s8 }
  0x14   :  { %p1114_p8 = por %p1113_p7, %p1112_p6 }
  0x16   :  { %p1115_p9 = pnand %p1114_p8, %p1108_p5 }
  0x18   :  { %1118 = shalt.err (!%p1115_p9)
}
  0x19   :  { %24 = dma.hbm_to_vmem [thread:$0]  %s1415_s0, 64, %s22_s29, [#allocation7]  }
  0x1a   :  { %s1127_s11 = scalar_lea.vmem %s43_s7, 256  ;;  %p1132_p11 = scmp.lt.s32.totalorder %s43_s7, %s43_s7 }
  0x1b   :  { %p1128_p10 = scmp.ne.s32.totalorder %s43_s7, %s1127_s11  ;;  %p1133_p12 = scmp.lt.s32.totalorder %s1127_s11, %s1127_s11 }
  0x1d   :  { %p1134_p13 = por %p1133_p12, %p1132_p11 }
  0x1f   :  { %p1135_p0 = pnand %p1134_p13, %p1128_p10 }
  0x21   :  { %1138 = shalt.err (!%p1135_p0)
}
  0x22   :  { %48 = dma.hbm_to_vmem [thread:$0]  %s1417_s2, 256, %s43_s7, [#allocation10], %s1188_s24, %s1188_s24, %s1189_s25  }
  0x23   :  { %s1192_s13 = smov [#allocation12]  }
  0x24   :  { %s56_s14 = sshll.u32 %s1192_s13, 4  ;;  %s57_s14 = int_to_ptr.vmem [resolvable:$true] %s56_s14 }
  0x25   :  { %s1147_s15 = scalar_lea.vmem %s57_s14, 256  ;;  %p1152_p2 = scmp.lt.s32.totalorder %s57_s14, %s57_s14 }
  0x26   :  { %p1148_p1 = scmp.ne.s32.totalorder %s57_s14, %s1147_s15  ;;  %p1153_p3 = scmp.lt.s32.totalorder %s1147_s15, %s1147_s15 }
  0x28   :  { %p1154_p4 = por %p1153_p3, %p1152_p2 }
  0x2a   :  { %p1155_p5 = pnand %p1154_p4, %p1148_p1 }
  0x2c   :  { %1158 = shalt.err (!%p1155_p5)
}
  0x2d   :  { %62 = dma.hbm_to_vmem [thread:$0]  %s1419_s4, 256, %s57_s14, [#allocation13], %s1188_s24, %s1188_s24, %s1189_s25  }
  0x2e   :  { %1179 = dma.done.wait [#allocation7], 64  }
  0x2f   :  { %1180 = vsyncadd [#allocation7], 4294967232 }
  0x30   :  { %1181 = dma.done.wait [#allocation10], 384  }
  0x31   :  { %1182 = vsyncadd [#allocation10], 4294966912 }
  0x32   :  { %1183 = dma.done.wait [#allocation13], 256  }
  0x33   :  { %1184 = vsyncadd [#allocation13], 4294967040  ;;  %vm82_vm0 = vcmask 253952   ;;  %v1193_v0 = vmov 0.0   ;;  %vm1194_vm1 = vmmov 0   ;;  %v1022_v1 = vld [vmem:[#allocation9] sm:$0xff]  }
  0x34   :  { %933 = vmatprep.subr.bf16.mxu0 %v1193_v0  ;;  %939 = vmatprep.subr.bf16.mxu1 %v1193_v0  ;;  %83 = vst.msk [vmem:[#allocation4] sm:$0x1] %vm82_vm0, %v1193_v0  ;;  %84 = vst.msk [vmem:[#allocation5] sm:$0x1] %vm82_vm0, %v1193_v0  ;;  %v1264_v2 = vld [vmem:[#allocation11 + $0x8] sm:$0xff]   ;;  %vm101_vm2 = vcmask 130048  }
  0x35   :  { %935 = vmatprep.mubr.msk.bf16.mxu0 %vm1194_vm1, %v1193_v0  ;;  %943 = vmatprep.mubr.msk.bf16.mxu1 %vm1194_vm1, %v1193_v0  ;;  %v85_v3 = vld [vmem:[#allocation6] sm:$0xf]  ;;  %v1267_v4 = vld [vmem:[#allocation11] sm:$0xff]   ;;  %vm166_vm3 = vcmask 261120   ;;  %s1195_s17 = smov 32   ;;  %s1196_s19 = smov 96  }
  0x36   :  { %934 = vmatpush3.bf16.msra.mxu0 %v1022_v1  ;;  %940 = vmatpush3.bf16.msra.mxu1 %v1264_v2  ;;  %v886_v7 = vld [vmem:[%s1418_s3] ss:$0 sm:$0xff] }
  0x37   :  { %947 = vmatprep.subr.bf16.mxu0 %v1193_v0  ;;  %941 = vmatprep.subr.bf16.mxu1 %v1193_v0 }
  0x39   :  { %936 = vmatmul.mubr.msk.bf16.vlgmr.msra.gmra.mxu0 %vm101_vm2, %v85_v3 }
  0x3a   :  { %948 = vmatpush3.bf16.msra.mxu0 %v1264_v2  ;;  %951 = vmatprep.mubr.msk.bf16.mxu0 %vm1194_vm1, %v1193_v0 }
  0x3b   :  { %v150_v5 = vld [vmem:[#allocation4] sm:$0x1]  ;;  %942 = vmatpush3.bf16.msra.mxu1 %v1267_v4  ;;  %949 = vmatprep.subr.bf16.mxu0 %v1193_v0  ;;  %v892_v20 = vld [vmem:[#allocation5] ss:$0 sm:$0xff] }
  0x3c   :  { %v153_v6 = vpack.c.bf16 %v150_v5, %v150_v5  ;;  %955 = vmatprep.subr.bf16.mxu1 %v1193_v0 }
  0x3e   :  { %944 = vmatmul.mubr.msk.bf16.vlgmr.msra.gmra.mxu1 %vm166_vm3, %v153_v6  ;;  %950 = vmatpush3.bf16.msra.mxu0 %v1267_v4 }
  0x3f   :  { %956 = vmatpush3.bf16.msra.mxu1 %v1264_v2  ;;  %959 = vmatprep.mubr.msk.bf16.mxu1 %vm1194_vm1, %v1193_v0 }
  0x40   :  { %957 = vmatprep.subr.bf16.mxu1 %v1193_v0  ;;  %963 = vmatprep.subr.bf16.mxu0 %v1193_v0 }
  0x43   :  { %958 = vmatpush3.bf16.msra.mxu1 %v1267_v4 }
  0x44   :  { %971 = vmatprep.subr.bf16.mxu1 %v1193_v0 }
  0xf9   :  { %v139_v8 = vpop.f32.mrf.mxu0 }
  0xfa   :  { %v140_v9 = vadd.f32 %v886_v7, %v139_v8 }
  0xfb   :  { %v937_v10 = vpop.f32.mrf.mxu0 }
  0xfc   :  { %145 = vst [vmem:[#allocation2] sm:$0xff] %v140_v9 }
  0xfd   :  { %v142_v11 = vpop.f32.mrf.mxu0 }
  0xfe   :  { %v204_v12 = vpop.f32.mrf.mxu1 }
  0xff   :  { %v938_v13 = vpop.f32.mrf.mxu0 }
 0x100   :  { %v945_v14 = vpop.f32.mrf.mxu1 }
 0x102   :  { %v207_v15 = vpop.f32.mrf.mxu1 }
 0x103   :  { %v152_v16 = vld [vmem:[#allocation2] sm:$0x1]  ;;  %v247_v36 = vld [vmem:[#allocation2 + $0x1] sm:$0x1]  ;;  %v323_v57 = vld [vmem:[#allocation2 + $0x2] sm:$0x1] }
 0x104   :  { %v210_v17 = vadd.f32 %v204_v12, %v152_v16  ;;  %v946_v18 = vpop.f32.mrf.mxu1 }
 0x106   :  { %1027 = vtanh.f32 %v210_v17  ;;  %v211_v21 = vmul.f32 0.5, %v210_v17  ;;  %v399_v17 = vld [vmem:[#allocation2 + $0x3] sm:$0x1] }
 0x108   :  { %1029 = vtanh.f32 %v211_v21 }
 0x113   :  { %v1028_v19 = vpop.eup %1027 }
 0x114   :  { %226 = vrot.lane.b32.xlu0 %v1028_v19, %s1188_s24 }
 0x115   :  { %v1030_v22 = vpop.eup %1029 }
 0x116   :  { %v213_v23 = vadd.f32 1.0, %v1030_v22 }
 0x118   :  { %221 = vrot.lane.b32.xlu0 %v892_v20, %s1195_s17  ;;  %v214_v24 = vmul.f32 0.5, %v213_v23 }
 0x186   :  { %v227_v25 = vpop.permute.xlu0 %226 }
 0x187   :  { %v229_v26 = vmul.f32 %v227_v25, %v214_v24 }
 0x189   :  { %231 = vrot.lane.b32.xlu1 %v229_v26, %s1195_s17 }
 0x18a   :  { %v222_v27 = vpop.permute.xlu0 %221 }
 0x18b   :  { %v224_v28 = vmul.f32 %v222_v27, %v214_v24 }
 0x1fb   :  { %v232_v29 = vpop.permute.xlu1 %231 }
 0x1fc   :  { %v234_v30 = vadd.f32 %v232_v29, %v224_v28 }
 0x1fe   :  { %1031 = vtanh.f32 %v234_v30 }
 0x20b   :  { %v1032_v31 = vpop.eup %1031 }
 0x20c   :  { %237 = vrot.lane.b32.xlu1 %v1032_v31, %s1188_s24 }
 0x27e   :  { %v238_v32 = vpop.permute.xlu1 %237 }
 0x27f   :  { %v1293_v33 = vmul.f32 %v238_v32, %v214_v24 }
 0x281   :  { %v248_v34 = vpack.c.bf16 %v1293_v33, %v1293_v33 }
 0x283   :  { %250 = vrot.lane.b32.xlu0 %v248_v34, %s1195_s17 }
 0x2f5   :  { %v251_v35 = vpop.permute.xlu0 %250 }
 0x2f6   :  { %952 = vmatmul.mubr.msk.bf16.vlgmr.msra.gmra.mxu0 %vm166_vm3, %v251_v35 }
 0x2f7   :  { %964 = vmatpush3.bf16.msra.mxu0 %v1264_v2  ;;  %967 = vmatprep.mubr.msk.bf16.mxu0 %vm1194_vm1, %v1193_v0 }
 0x2f8   :  { %965 = vmatprep.subr.bf16.mxu0 %v1193_v0 }
 0x2fb   :  { %966 = vmatpush3.bf16.msra.mxu0 %v1267_v4 }
 0x2fc   :  { %979 = vmatprep.subr.bf16.mxu0 %v1193_v0 }
 0x3b6   :  { %v289_v37 = vpop.f32.mrf.mxu0 }
 0x3b7   :  { %v295_v38 = vadd.f32 %v289_v37, %v247_v36 }
 0x3b8   :  { %v953_v39 = vpop.f32.mrf.mxu0 }
 0x3b9   :  { %1033 = vtanh.f32 %v295_v38  ;;  %v296_v43 = vmul.f32 0.5, %v295_v38  ;;  %v475_v39 = vld [vmem:[#allocation2 + $0x4] sm:$0x1] }
 0x3ba   :  { %v292_v40 = vpop.f32.mrf.mxu0 }
 0x3bb   :  { %1035 = vtanh.f32 %v296_v43 }
 0x3bc   :  { %v954_v41 = vpop.f32.mrf.mxu0 }
 0x3c6   :  { %v1034_v42 = vpop.eup %1033 }
 0x3c7   :  { %303 = vrot.lane.b32.xlu1 %v1034_v42, %s1188_s24 }
 0x3c8   :  { %v1036_v44 = vpop.eup %1035 }
 0x3c9   :  { %v298_v45 = vadd.f32 1.0, %v1036_v44 }
 0x3cb   :  { %v299_v46 = vmul.f32 0.5, %v298_v45 }
 0x3cd   :  { %v301_v49 = vmul.f32 %v299_v46, %v234_v30 }
 0x439   :  { %v304_v47 = vpop.permute.xlu1 %303 }
 0x43a   :  { %v306_v48 = vmul.f32 %v304_v47, %v299_v46 }
 0x43c   :  { %308 = vrot.lane.b32.xlu0 %v306_v48, %s1195_s17 }
 0x4ae   :  { %v309_v50 = vpop.permute.xlu0 %308 }
 0x4af   :  { %v311_v51 = vadd.f32 %v309_v50, %v301_v49 }
 0x4b1   :  { %1037 = vtanh.f32 %v311_v51 }
 0x4be   :  { %v1038_v52 = vpop.eup %1037 }
 0x4bf   :  { %314 = vrot.lane.b32.xlu1 %v1038_v52, %s1188_s24 }
 0x531   :  { %v315_v53 = vpop.permute.xlu1 %314 }
 0x532   :  { %v1308_v54 = vmul.f32 %v315_v53, %v299_v46 }
 0x534   :  { %v324_v55 = vpack.c.bf16 %v1308_v54, %v1308_v54 }
 0x536   :  { %326 = vrot.lane.b32.xlu0 %v324_v55, %s1195_s17 }
 0x5a8   :  { %v327_v56 = vpop.permute.xlu0 %326 }
 0x5a9   :  { %960 = vmatmul.mubr.msk.bf16.vlgmr.msra.gmra.mxu1 %vm166_vm3, %v327_v56 }
 0x5aa   :  { %972 = vmatpush3.bf16.msra.mxu1 %v1264_v2  ;;  %975 = vmatprep.mubr.msk.bf16.mxu1 %vm1194_vm1, %v1193_v0 }
 0x5ab   :  { %973 = vmatprep.subr.bf16.mxu1 %v1193_v0 }
 0x5ae   :  { %974 = vmatpush3.bf16.msra.mxu1 %v1267_v4 }
 0x5af   :  { %987 = vmatprep.subr.bf16.mxu1 %v1193_v0 }
 0x669   :  { %v365_v58 = vpop.f32.mrf.mxu1 }
 0x66a   :  { %v371_v59 = vadd.f32 %v365_v58, %v323_v57 }
 0x66b   :  { %v961_v60 = vpop.f32.mrf.mxu1 }
 0x66c   :  { %1039 = vtanh.f32 %v371_v59  ;;  %v372_v1 = vmul.f32 0.5, %v371_v59 }
 0x66d   :  { %v368_v61 = vpop.f32.mrf.mxu1 }
 0x66e   :  { %1041 = vtanh.f32 %v372_v1  ;;  %v551_v61 = vld [vmem:[#allocation2 + $0x5] sm:$0x1] }
 0x66f   :  { %v962_v62 = vpop.f32.mrf.mxu1 }
 0x679   :  { %v1040_v63 = vpop.eup %1039 }
 0x67a   :  { %379 = vrot.lane.b32.xlu1 %v1040_v63, %s1188_s24 }
 0x67b   :  { %v1042_v3 = vpop.eup %1041 }
 0x67c   :  { %v374_v5 = vadd.f32 1.0, %v1042_v3 }
 0x67e   :  { %v375_v6 = vmul.f32 0.5, %v374_v5 }
 0x680   :  { %v377_v9 = vmul.f32 %v375_v6, %v311_v51 }
 0x6ec   :  { %v380_v7 = vpop.permute.xlu1 %379 }
 0x6ed   :  { %v382_v8 = vmul.f32 %v380_v7, %v375_v6 }
 0x6ef   :  { %384 = vrot.lane.b32.xlu0 %v382_v8, %s1195_s17 }
 0x761   :  { %v385_v10 = vpop.permute.xlu0 %384 }
 0x762   :  { %v387_v11 = vadd.f32 %v385_v10, %v377_v9 }
 0x764   :  { %1043 = vtanh.f32 %v387_v11 }
 0x771   :  { %v1044_v12 = vpop.eup %1043 }
 0x772   :  { %390 = vrot.lane.b32.xlu1 %v1044_v12, %s1188_s24 }
 0x7e4   :  { %v391_v13 = vpop.permute.xlu1 %390 }
 0x7e5   :  { %v1323_v14 = vmul.f32 %v391_v13, %v375_v6 }
 0x7e7   :  { %v400_v15 = vpack.c.bf16 %v1323_v14, %v1323_v14 }
 0x7e9   :  { %402 = vrot.lane.b32.xlu0 %v400_v15, %s1195_s17 }
 0x85b   :  { %v403_v16 = vpop.permute.xlu0 %402 }
 0x85c   :  { %968 = vmatmul.mubr.msk.bf16.vlgmr.msra.gmra.mxu0 %vm166_vm3, %v403_v16 }
 0x85d   :  { %980 = vmatpush3.bf16.msra.mxu0 %v1264_v2  ;;  %983 = vmatprep.mubr.msk.bf16.mxu0 %vm1194_vm1, %v1193_v0 }
 0x85e   :  { %981 = vmatprep.subr.bf16.mxu0 %v1193_v0 }
 0x861   :  { %982 = vmatpush3.bf16.msra.mxu0 %v1267_v4 }
 0x862   :  { %995 = vmatprep.subr.bf16.mxu0 %v1193_v0 }
 0x91c   :  { %v441_v18 = vpop.f32.mrf.mxu0 }
 0x91d   :  { %v447_v19 = vadd.f32 %v441_v18, %v399_v17 }
 0x91e   :  { %v969_v20 = vpop.f32.mrf.mxu0 }
 0x91f   :  { %1045 = vtanh.f32 %v447_v19  ;;  %v448_v24 = vmul.f32 0.5, %v447_v19  ;;  %v627_v20 = vld [vmem:[#allocation2 + $0x6] sm:$0x1] }
 0x920   :  { %v444_v21 = vpop.f32.mrf.mxu0 }
 0x921   :  { %1047 = vtanh.f32 %v448_v24 }
 0x922   :  { %v970_v22 = vpop.f32.mrf.mxu0 }
 0x92c   :  { %v1046_v23 = vpop.eup %1045 }
 0x92d   :  { %455 = vrot.lane.b32.xlu1 %v1046_v23, %s1188_s24 }
 0x92e   :  { %v1048_v25 = vpop.eup %1047 }
 0x92f   :  { %v450_v26 = vadd.f32 1.0, %v1048_v25 }
 0x931   :  { %v451_v27 = vmul.f32 0.5, %v450_v26 }
 0x933   :  { %v453_v30 = vmul.f32 %v451_v27, %v387_v11 }
 0x99f   :  { %v456_v28 = vpop.permute.xlu1 %455 }
 0x9a0   :  { %v458_v29 = vmul.f32 %v456_v28, %v451_v27 }
 0x9a2   :  { %460 = vrot.lane.b32.xlu0 %v458_v29, %s1195_s17 }
 0xa14   :  { %v461_v31 = vpop.permute.xlu0 %460 }
 0xa15   :  { %v463_v32 = vadd.f32 %v461_v31, %v453_v30 }
 0xa17   :  { %1049 = vtanh.f32 %v463_v32 }
 0xa24   :  { %v1050_v34 = vpop.eup %1049 }
 0xa25   :  { %466 = vrot.lane.b32.xlu1 %v1050_v34, %s1188_s24 }
 0xa97   :  { %v467_v35 = vpop.permute.xlu1 %466 }
 0xa98   :  { %v1338_v36 = vmul.f32 %v467_v35, %v451_v27 }
 0xa9a   :  { %v476_v37 = vpack.c.bf16 %v1338_v36, %v1338_v36 }
 0xa9c   :  { %478 = vrot.lane.b32.xlu0 %v476_v37, %s1195_s17 }
 0xb0e   :  { %v479_v38 = vpop.permute.xlu0 %478 }
 0xb0f   :  { %976 = vmatmul.mubr.msk.bf16.vlgmr.msra.gmra.mxu1 %vm166_vm3, %v479_v38 }
 0xb10   :  { %988 = vmatpush3.bf16.msra.mxu1 %v1264_v2  ;;  %991 = vmatprep.mubr.msk.bf16.mxu1 %vm1194_vm1, %v1193_v0 }
 0xb11   :  { %989 = vmatprep.subr.bf16.mxu1 %v1193_v0 }
 0xb14   :  { %990 = vmatpush3.bf16.msra.mxu1 %v1267_v4 }
 0xb15   :  { %1003 = vmatprep.subr.bf16.mxu1 %v1193_v0 }
 0xbcf   :  { %v517_v40 = vpop.f32.mrf.mxu1 }
 0xbd0   :  { %v523_v41 = vadd.f32 %v517_v40, %v475_v39 }
 0xbd1   :  { %v977_v42 = vpop.f32.mrf.mxu1 }
 0xbd2   :  { %1051 = vtanh.f32 %v523_v41  ;;  %v524_v46 = vmul.f32 0.5, %v523_v41 }
 0xbd3   :  { %v520_v43 = vpop.f32.mrf.mxu1 }
 0xbd4   :  { %1053 = vtanh.f32 %v524_v46  ;;  %v703_v43 = vld [vmem:[#allocation2 + $0x7] sm:$0x1] }
 0xbd5   :  { %v978_v44 = vpop.f32.mrf.mxu1 }
 0xbdf   :  { %v1052_v45 = vpop.eup %1051 }
 0xbe0   :  { %531 = vrot.lane.b32.xlu1 %v1052_v45, %s1188_s24 }
 0xbe1   :  { %v1054_v47 = vpop.eup %1053 }
 0xbe2   :  { %v526_v48 = vadd.f32 1.0, %v1054_v47 }
 0xbe4   :  { %v527_v49 = vmul.f32 0.5, %v526_v48 }
 0xbe6   :  { %v529_v52 = vmul.f32 %v527_v49, %v463_v32 }
 0xc52   :  { %v532_v50 = vpop.permute.xlu1 %531 }
 0xc53   :  { %v534_v51 = vmul.f32 %v532_v50, %v527_v49 }
 0xc55   :  { %536 = vrot.lane.b32.xlu0 %v534_v51, %s1195_s17 }
 0xcc7   :  { %v537_v53 = vpop.permute.xlu0 %536 }
 0xcc8   :  { %v539_v55 = vadd.f32 %v537_v53, %v529_v52 }
 0xcca   :  { %1055 = vtanh.f32 %v539_v55 }
 0xcd7   :  { %v1056_v56 = vpop.eup %1055 }
 0xcd8   :  { %542 = vrot.lane.b32.xlu1 %v1056_v56, %s1188_s24 }
 0xd4a   :  { %v543_v57 = vpop.permute.xlu1 %542 }
 0xd4b   :  { %v1353_v58 = vmul.f32 %v543_v57, %v527_v49 }
 0xd4d   :  { %v552_v59 = vpack.c.bf16 %v1353_v58, %v1353_v58 }
 0xd4f   :  { %554 = vrot.lane.b32.xlu0 %v552_v59, %s1195_s17 }
 0xdc1   :  { %v555_v60 = vpop.permute.xlu0 %554 }
 0xdc2   :  { %984 = vmatmul.mubr.msk.bf16.vlgmr.msra.gmra.mxu0 %vm166_vm3, %v555_v60 }
 0xdc3   :  { %996 = vmatpush3.bf16.msra.mxu0 %v1264_v2  ;;  %999 = vmatprep.mubr.msk.bf16.mxu0 %vm1194_vm1, %v1193_v0 }
 0xdc4   :  { %997 = vmatprep.subr.bf16.mxu0 %v1193_v0 }
 0xdc7   :  { %998 = vmatpush3.bf16.msra.mxu0 %v1267_v4 }
 0xe82   :  { %v593_v62 = vpop.f32.mrf.mxu0 }
 0xe83   :  { %v599_v63 = vadd.f32 %v593_v62, %v551_v61 }
 0xe84   :  { %v985_v1 = vpop.f32.mrf.mxu0 }
 0xe85   :  { %1057 = vtanh.f32 %v599_v63  ;;  %v600_v7 = vmul.f32 0.5, %v599_v63  ;;  %v1026_v1 = vld [vmem:[#allocation12] sm:$0xff]  }
 0xe86   :  { %v596_v3 = vpop.f32.mrf.mxu0 }
 0xe87   :  { %1059 = vtanh.f32 %v600_v7 }
 0xe88   :  { %v986_v5 = vpop.f32.mrf.mxu0 }
 0xe92   :  { %v1058_v6 = vpop.eup %1057 }
 0xe93   :  { %607 = vrot.lane.b32.xlu1 %v1058_v6, %s1188_s24 }
 0xe94   :  { %v1060_v2 = vpop.eup %1059 }
 0xe95   :  { %v602_v8 = vadd.f32 1.0, %v1060_v2 }
 0xe97   :  { %v603_v9 = vmul.f32 0.5, %v602_v8  ;;  %v853_v8 = vlaneseq }
 0xe99   :  { %v605_v4 = vmul.f32 %v603_v9, %v539_v55 }
 0xf05   :  { %v608_v10 = vpop.permute.xlu1 %607 }
 0xf06   :  { %v610_v11 = vmul.f32 %v608_v10, %v603_v9  ;;  %v900_v10 = vld [vmem:[%s1420_s5] ss:$0 sm:$0xff]  ;;  %s1197_s5 = smov [#allocation14]  }
 0xf07   :  { %s875_s20 = sshll.u32 %s1197_s5, 4  ;;  %s876_s20 = int_to_ptr.vmem [resolvable:$true] %s875_s20 }
 0xf08   :  { %612 = vrot.lane.b32.xlu0 %v610_v11, %s1195_s17  ;;  %s1159_s21 = scalar_lea.vmem %s876_s20, 128  ;;  %p1164_p7 = scmp.lt.s32.totalorder %s876_s20, %s876_s20 }
 0xf09   :  { %p1160_p6 = scmp.ne.s32.totalorder %s876_s20, %s1159_s21  ;;  %p1165_p8 = scmp.lt.s32.totalorder %s1159_s21, %s1159_s21 }
 0xf0b   :  { %p1166_p9 = por %p1165_p8, %p1164_p7 }
 0xf0d   :  { %p1167_p10 = pnand %p1166_p9, %p1160_p6 }
 0xf7a   :  { %v613_v12 = vpop.permute.xlu0 %612 }
 0xf7b   :  { %v615_v13 = vadd.f32 %v613_v12, %v605_v4 }
 0xf7d   :  { %1061 = vtanh.f32 %v615_v13 }
 0xf8a   :  { %v1062_v15 = vpop.eup %1061 }
 0xf8b   :  { %618 = vrot.lane.b32.xlu1 %v1062_v15, %s1188_s24 }
 0xffd   :  { %v619_v16 = vpop.permute.xlu1 %618 }
 0xffe   :  { %v1367_v17 = vmul.f32 %v619_v16, %v603_v9  ;;  %v854_v9 = vand.u32 127, %v853_v8 }
0x1000   :  { %v628_v18 = vpack.c.bf16 %v1367_v17, %v1367_v17  ;;  %vm855_vm4 = vcmp.lt.s32.totalorder %v854_v9, 8 }
0x1002   :  { %630 = vrot.lane.b32.xlu0 %v628_v18, %s1195_s17 }
0x1074   :  { %v631_v19 = vpop.permute.xlu0 %630 }
0x1075   :  { %992 = vmatmul.mubr.msk.bf16.vlgmr.msra.gmra.mxu1 %vm166_vm3, %v631_v19 }
0x1076   :  { %1007 = vmatprep.mubr.msk.bf16.mxu1 %vm1194_vm1, %v1193_v0 }
0x1135   :  { %v669_v21 = vpop.f32.mrf.mxu1 }
0x1136   :  { %v675_v22 = vadd.f32 %v669_v21, %v627_v20 }
0x1137   :  { %v993_v23 = vpop.f32.mrf.mxu1 }
0x1138   :  { %1063 = vtanh.f32 %v675_v22  ;;  %v676_v27 = vmul.f32 0.5, %v675_v22 }
0x1139   :  { %v672_v24 = vpop.f32.mrf.mxu1 }
0x113a   :  { %1065 = vtanh.f32 %v676_v27 }
0x113b   :  { %v994_v25 = vpop.f32.mrf.mxu1 }
0x1145   :  { %v1064_v26 = vpop.eup %1063 }
0x1146   :  { %683 = vrot.lane.b32.xlu1 %v1064_v26, %s1188_s24 }
0x1147   :  { %v1066_v28 = vpop.eup %1065 }
0x1148   :  { %v678_v29 = vadd.f32 1.0, %v1066_v28 }
0x114a   :  { %v679_v30 = vmul.f32 0.5, %v678_v29 }
0x114c   :  { %v681_v34 = vmul.f32 %v679_v30, %v615_v13 }
0x11b8   :  { %v684_v31 = vpop.permute.xlu1 %683 }
0x11b9   :  { %v686_v32 = vmul.f32 %v684_v31, %v679_v30 }
0x11bb   :  { %688 = vrot.lane.b32.xlu0 %v686_v32, %s1195_s17 }
0x122d   :  { %v689_v35 = vpop.permute.xlu0 %688 }
0x122e   :  { %v691_v37 = vadd.f32 %v689_v35, %v681_v34 }
0x1230   :  { %1067 = vtanh.f32 %v691_v37 }
0x123d   :  { %v1068_v38 = vpop.eup %1067 }
0x123e   :  { %694 = vrot.lane.b32.xlu1 %v1068_v38, %s1188_s24 }
0x12b0   :  { %v695_v39 = vpop.permute.xlu1 %694 }
0x12b1   :  { %v697_v40 = vmul.f32 %v695_v39, %v679_v30 }
0x12b3   :  { %v704_v41 = vpack.c.bf16 %v697_v40, %v697_v40 }
0x12b5   :  { %706 = vrot.lane.b32.xlu0 %v704_v41, %s1195_s17 }
0x1327   :  { %v707_v42 = vpop.permute.xlu0 %706 }
0x1328   :  { %1000 = vmatmul.mubr.msk.bf16.vlgmr.msra.gmra.mxu0 %vm166_vm3, %v707_v42 }
0x13e8   :  { %v745_v44 = vpop.f32.mrf.mxu0 }
0x13e9   :  { %v751_v45 = vadd.f32 %v745_v44, %v703_v43 }
0x13ea   :  { %v1001_v46 = vpop.f32.mrf.mxu0 }
0x13eb   :  { %1069 = vtanh.f32 %v751_v45  ;;  %v752_v50 = vmul.f32 0.5, %v751_v45 }
0x13ec   :  { %v748_v47 = vpop.f32.mrf.mxu0 }
0x13ed   :  { %1071 = vtanh.f32 %v752_v50 }
0x13ee   :  { %v1002_v48 = vpop.f32.mrf.mxu0 }
0x13f8   :  { %v1070_v49 = vpop.eup %1069 }
0x13f9   :  { %759 = vrot.lane.b32.xlu1 %v1070_v49, %s1188_s24 }
0x13fa   :  { %v1072_v51 = vpop.eup %1071 }
0x13fb   :  { %v754_v52 = vadd.f32 1.0, %v1072_v51 }
0x13fd   :  { %v755_v53 = vmul.f32 0.5, %v754_v52 }
0x13ff   :  { %v757_v57 = vmul.f32 %v755_v53, %v691_v37 }
0x146b   :  { %v760_v55 = vpop.permute.xlu1 %759 }
0x146c   :  { %v762_v56 = vmul.f32 %v760_v55, %v755_v53 }
0x146e   :  { %764 = vrot.lane.b32.xlu0 %v762_v56, %s1195_s17 }
0x1472   :  { %242 = vrot.lane.b32.xlu0 %v1293_v33, %s1195_s17 }
0x1476   :  { %395 = vrot.lane.b32.xlu0 %v1323_v14, %s1195_s17 }
0x147a   :  { %547 = vrot.lane.b32.xlu0 %v1353_v58, %s1195_s17  ;;  %v1025_v58 = vld [vmem:[#allocation12 + $0x8] sm:$0xff]  }
0x147b   :  { %1004 = vmatpush3.bf16.msra.mxu1 %v1025_v58 }
0x147c   :  { %1005 = vmatprep.subr.bf16.mxu1 %v1193_v0 }
0x147e   :  { %699 = vrot.lane.b32.xlu0 %v697_v40, %s1195_s17 }
0x147f   :  { %1006 = vmatpush3.bf16.msra.mxu1 %v1026_v1 }
0x14e0   :  { %v765_v59 = vpop.permute.xlu0 %764 }
0x14e1   :  { %v767_v60 = vadd.f32 %v765_v59, %v757_v57 }
0x14e3   :  { %1073 = vtanh.f32 %v767_v60 }
0x14e4   :  { %v243_v61 = vpop.permute.xlu0 %242 }
0x14e5   :  { %246 = vst.msk [vmem:[#allocation3] sm:$0x1] %vm82_vm0, %v243_v61 }
0x14e8   :  { %v396_v62 = vpop.permute.xlu0 %395 }
0x14e9   :  { %398 = vst.msk [vmem:[#allocation3 + $0x2] sm:$0x1] %vm82_vm0, %v396_v62 }
0x14ec   :  { %v548_v63 = vpop.permute.xlu0 %547 }
0x14ed   :  { %550 = vst.msk [vmem:[#allocation3 + $0x4] sm:$0x1] %vm82_vm0, %v548_v63 }
0x14f0   :  { %v1074_v33 = vpop.eup %1073  ;;  %v700_v14 = vpop.permute.xlu0 %699 }
0x14f1   :  { %702 = vst.msk [vmem:[#allocation3 + $0x6] sm:$0x1] %vm82_vm0, %v700_v14  ;;  %770 = vrot.lane.b32.xlu1 %v1074_v33, %s1188_s24 }
0x14f5   :  { %319 = vrot.lane.b32.xlu1 %v1308_v54, %s1195_s17 }
0x14f9   :  { %471 = vrot.lane.b32.xlu1 %v1338_v36, %s1195_s17 }
0x14fd   :  { %623 = vrot.lane.b32.xlu1 %v1367_v17, %s1195_s17 }
0x1563   :  { %v771_v3 = vpop.permute.xlu1 %770 }
0x1564   :  { %v773_v5 = vmul.f32 %v771_v3, %v755_v53 }
0x1566   :  { %775 = vrot.lane.b32.xlu1 %v773_v5, %s1195_s17 }
0x1567   :  { %v320_v6 = vpop.permute.xlu1 %319 }
0x1568   :  { %322 = vst.msk [vmem:[#allocation3 + $0x1] sm:$0x1] %vm82_vm0, %v320_v6 }
0x156b   :  { %v472_v54 = vpop.permute.xlu1 %471 }
0x156c   :  { %474 = vst.msk [vmem:[#allocation3 + $0x3] sm:$0x1] %vm82_vm0, %v472_v54 }
0x156f   :  { %v624_v36 = vpop.permute.xlu1 %623 }
0x1570   :  { %626 = vst.msk [vmem:[#allocation3 + $0x5] sm:$0x1] %vm82_vm0, %v624_v36 }
0x15d8   :  { %v776_v7 = vpop.permute.xlu1 %775 }
0x15d9   :  { %778 = vst.msk [vmem:[#allocation3 + $0x7] sm:$0x1] %vm82_vm0, %v776_v7  ;;  %779 = vst.msk [vmem:[#allocation4] sm:$0x1] %vm82_vm0, %v776_v7 }
0x15e0   :  { %v785_v0 = vld [vmem:[#allocation3] sm:$0xff] }
0x15e1   :  { %v786_v2 = vpack.c.bf16 %v785_v0, %v785_v0 }
0x15e3   :  { %1008 = vmatmul.mubr.msk.bf16.vlgmr.msra.gmra.mxu1 %vm166_vm3, %v786_v2 }
0x16a3   :  { %v847_v11 = vpop.f32.mrf.mxu1 }
0x16a4   :  { %v848_v4 = vadd.f32 %v900_v10, %v847_v11 }
0x16a5   :  { %v1009_v12 = vpop.f32.mrf.mxu1 }
0x16a6   :  { %v856_v13 = vsel %vm855_vm4, %v848_v4, -1e+30 }
0x16a7   :  { %857 = vmax.xlane.f32.xlu0 %v856_v13  ;;  %v850_v15 = vpop.f32.mrf.mxu1 }
0x16a9   :  { %v1010_v16 = vpop.f32.mrf.mxu1 }
0x16bd   :  { %781 = vrot.lane.b32.xlu0 %v767_v60, %s1196_s19 }
0x1730   :  { %v858_v17 = vpop.xlane.xlu0 %857 }
0x1731   :  { %v859_v18 = vsub.f32 %v856_v13, %v858_v17 }
0x1733   :  { %v860_v19 = vmul.f32 1.442695, %v859_v18 }
0x1734   :  { %v782_v20 = vpop.permute.xlu0 %781 }
0x1735   :  { %1075 = vpow2.f32 %v860_v19  ;;  %784 = vst.msk [vmem:[#allocation5] sm:$0x1] %vm82_vm0, %v782_v20 }
0x1742   :  { %v1076_v21 = vpop.eup %1075 }
0x1743   :  { %862 = vadd.xlane.f32.xlu1 %v1076_v21 }
0x17cc   :  { %v863_v22 = vpop.xlane.xlu1 %862 }
0x17cd   :  { %1077 = vlog2.f32 %v863_v22 }
0x17da   :  { %v1078_v23 = vpop.eup %1077 }
0x17db   :  { %v865_v24 = vmul.f32 0.6931472, %v1078_v23 }
0x17dd   :  { %v866_v25 = vadd.f32 %v865_v24, %v858_v17 }
0x17df   :  { %v867_v26 = vsub.f32 %v856_v13, %v866_v25 }
0x17e1   :  { %868 = vst [vmem:[#allocation14] sm:$0xff] %v867_v26 }
0x17e2   :  { %1170 = shalt.err (!%p1167_p10)
}
0x17e3   :  { %878 = dma.vmem_to_hbm [thread:$0]  %s876_s20, 128, %s1421_s6, [#allocation8]  }
0x17e4   :  { %1185 = dma.done.wait [#allocation8], 128  }
0x17e5   :  { %1186 = vsyncadd [#allocation8], 4294967168 }
0x17e6   :  { %882 = vsyncpa [#allocation7], 1 }
0x17e7   :  { %883 = vsyncpa [#allocation10], 1 }
0x17e8   :  { %884 = vsyncpa [#allocation13], 1 }
0x17e9   :  { %885 = vsyncpa [#allocation8], 1 }

</bundles_post_ra>
